<compile_context>
chip_gen: v7x
topology: tpu7x:2x2x1
jax: 0.10.0
libtpu: 0.0.40
codegen_flags: <defaults>
</compile_context>

<pallas_src>
import functools

import jax
import jax.numpy as jnp
from jax import lax
from jax.experimental import pallas as pl
from jax.experimental.pallas import tpu as pltpu


def _triplet_loss_kernel(margin_ref, idx_ref, h1_ref, h2_ref, h3_ref, out_ref,
                         *, total_t, tile_t, n_rows):
    """One grid step: TILE_T triplets -> one lane-dense partial-sum block."""
    margin = margin_ref[0, 0]                      # SMEM scalar
    idx = idx_ref[...]                             # [tile_t, 3] int32

    h1 = h1_ref[...].astype(jnp.float32)           # [N, D] (resident in VMEM)
    h2 = h2_ref[...].astype(jnp.float32)
    h3 = h3_ref[...].astype(jnp.float32)

    # Row iota over the class/item axis, used to build one-hot selectors.
    iota_n = lax.broadcasted_iota(jnp.int32, (tile_t, n_rows), 1)

    def gather_rows(col, h):
        # One-hot gather on the MXU: exact selection (weights are 0.0 / 1.0).
        onehot = (idx[:, col:col + 1] == iota_n).astype(jnp.float32)
        return jnp.dot(onehot, h, preferred_element_type=jnp.float32)

    a = gather_rows(0, h1)                         # [tile_t, D]
    p = gather_rows(1, h2)
    n = gather_rows(2, h3)

    d_ap = a - p
    d_an = a - n
    # Single fused cross-lane reduction instead of two separate ones.
    sq_diff = jnp.sum(d_ap * d_ap - d_an * d_an, axis=1, keepdims=True)  # [tile_t, 1]
    per_row = jnp.maximum(margin + sq_diff, 0.0)   # F.relu

    # Mask padded tail rows (global row id >= true T).
    row_id = (pl.program_id(0) * tile_t
              + lax.broadcasted_iota(jnp.int32, (tile_t, 1), 0))
    per_row = jnp.where(row_id < total_t, per_row, 0.0)

    psum = jnp.sum(per_row)
    out_ref[...] = jnp.full(out_ref.shape, psum, dtype=jnp.float32)


def triplet_loss(h_c1, h_c2, h_c3, triplets, margin, *, tile_t=512):
    """Pallas TPU implementation of TripletLoss.forward.

    h_c1, h_c2, h_c3: [N, D] float arrays (f32 or bf16; upcast in-kernel).
    triplets:         [T, 3] int array of (anchor, pos, neg) row indices.
    margin:           python float or scalar.
    Returns a scalar float32 loss = mean(relu(margin + |a-p|^2 - |a-n|^2)) + 1e-16.
    """
    assert tile_t % 8 == 0, "tile_t must be a multiple of 8 (sublane tiling)"
    triplets = jnp.asarray(triplets, dtype=jnp.int32)
    T = triplets.shape[0]
    N, D = h_c1.shape

    num_tiles = pl.cdiv(T, tile_t)
    t_pad = num_tiles * tile_t
    if t_pad != T:
        # Padded rows point at row 0; they are masked out inside the kernel.
        triplets = jnp.pad(triplets, ((0, t_pad - T), (0, 0)))

    margin_arr = jnp.full((1, 1), margin, dtype=jnp.float32)

    kernel = functools.partial(
        _triplet_loss_kernel, total_t=T, tile_t=tile_t, n_rows=N)

    itemsize = jnp.dtype(h_c1.dtype).itemsize
    cost = pl.CostEstimate(
        flops=int(t_pad * (3 * 2 * N * D + 8 * D)),
        transcendentals=0,
        bytes_accessed=int(3 * N * D * itemsize + t_pad * 3 * 4
                           + num_tiles * 8 * 128 * 4 + 4),
    )

    partial_sums = pl.pallas_call(
        kernel,
        grid=(num_tiles,),
        out_shape=jax.ShapeDtypeStruct((num_tiles, 8, 128), jnp.float32),
        in_specs=[
            # margin scalar in SMEM (no recompile when margin changes).
            pl.BlockSpec(memory_space=pltpu.MemorySpace.SMEM),
            # Triplet index stream, tiled & pipelined over the grid.
            pl.BlockSpec((tile_t, 3), lambda i: (i, 0)),
            # Embedding matrices: full-array blocks, resident across the grid.
            pl.BlockSpec((N, D), lambda i: (0, 0)),
            pl.BlockSpec((N, D), lambda i: (0, 0)),
            pl.BlockSpec((N, D), lambda i: (0, 0)),
        ],
        # Lane-dense per-tile partial sums -> T axis can run in parallel
        # (megacore / 2 TCs on v7x); final reduction is done in JAX below.
        out_specs=pl.BlockSpec((1, 8, 128), lambda i: (i, 0, 0)),
        compiler_params=pltpu.CompilerParams(
            dimension_semantics=("parallel",)),
        cost_estimate=cost,
    )(margin_arr, triplets, h_c1, h_c2, h_c3)

    total = jnp.sum(partial_sums[:, 0, 0])
    return total / jnp.float32(T) + 1e-16


def _reference(h_c1, h_c2, h_c3, triplets, margin):
    # Pure-JAX reference of the PyTorch forward, for correctness checking.
    triplets = jnp.asarray(triplets, dtype=jnp.int32)
    sq_ap = jnp.sum((h_c1[triplets[:, 0]] - h_c2[triplets[:, 1]]) ** 2, axis=1)
    sq_an = jnp.sum((h_c1[triplets[:, 0]] - h_c3[triplets[:, 2]]) ** 2, axis=1)
    losses = jnp.maximum(margin + sq_ap - sq_an, 0.0)
    return jnp.mean(losses) + 1e-16


if __name__ == "__main__":
    key = jax.random.PRNGKey(0)
    k1, k2, k3, k4 = jax.random.split(key, 4)

    # Small shapes: N items, D-dim embeddings, T triplets (T not a multiple of
    # the tile size, to exercise the tail-masking path).
    N, D, T = 16, 32, 200
    margin = 1.0

    h_c1 = jax.random.normal(k1, (N, D), dtype=jnp.float32)
    h_c2 = jax.random.normal(k2, (N, D), dtype=jnp.float32)
    h_c3 = jax.random.normal(k3, (N, D), dtype=jnp.float32)
    triplets = jax.random.randint(k4, (T, 3), minval=0, maxval=N, dtype=jnp.int32)

    loss = triplet_loss(h_c1, h_c2, h_c3, triplets, margin, tile_t=64)
    loss = jax.block_until_ready(loss)

    ref = _reference(h_c1, h_c2, h_c3, triplets, margin)
    assert jnp.allclose(loss, ref, rtol=2e-3, atol=2e-3), (loss, ref)

    print("KERNEL_OK")
</pallas_src>

<mosaic_0001>
module attributes {stable_mosaic.version = 11 : i64} {
  func.func @_triplet_loss_kernel(%arg0: i32, %arg1: memref<1x1xf32, #tpu.memory_space<smem>>, %arg2: memref<64x3xi32, #tpu.memory_space<vmem>>, %arg3: memref<16x32xf32, #tpu.memory_space<vmem>>, %arg4: memref<16x32xf32, #tpu.memory_space<vmem>>, %arg5: memref<16x32xf32, #tpu.memory_space<vmem>>, %arg6: memref<1x8x128xf32, #tpu.memory_space<vmem>>) attributes {dimension_semantics = [#tpu.dimension_semantics<parallel>], iteration_bounds = array<i64: 4>, scalar_prefetch = 0 : i64, scratch_operands = 0 : i64, tpu.core_type = #tpu.core_type<tc>, window_params = [{transform_indices = @transform_0, window_bounds = array<i64: 1, 1>}, {transform_indices = @transform_1, window_bounds = array<i64: 64, 3>}, {pipeline_mode = #tpu.pipeline_mode<synchronous>, transform_indices = @transform_2, window_bounds = array<i64: 16, 32>}, {pipeline_mode = #tpu.pipeline_mode<synchronous>, transform_indices = @transform_3, window_bounds = array<i64: 16, 32>}, {pipeline_mode = #tpu.pipeline_mode<synchronous>, transform_indices = @transform_4, window_bounds = array<i64: 16, 32>}, {transform_indices = @transform_5, window_bounds = array<i64: 1, 8, 128>}]} {
    %c0 = arith.constant 0 : index
    %c0_0 = arith.constant 0 : index
    %0 = memref.load %arg1[%c0, %c0_0] : memref<1x1xf32, #tpu.memory_space<smem>>
    %c0_1 = arith.constant 0 : index
    %c0_2 = arith.constant 0 : index
    %1 = vector.load %arg2[%c0_1, %c0_2] : memref<64x3xi32, #tpu.memory_space<vmem>>, vector<64x3xi32>
    %c0_3 = arith.constant 0 : index
    %c0_4 = arith.constant 0 : index
    %2 = vector.load %arg3[%c0_3, %c0_4] : memref<16x32xf32, #tpu.memory_space<vmem>>, vector<16x32xf32>
    %c0_5 = arith.constant 0 : index
    %c0_6 = arith.constant 0 : index
    %3 = vector.load %arg4[%c0_5, %c0_6] : memref<16x32xf32, #tpu.memory_space<vmem>>, vector<16x32xf32>
    %c0_7 = arith.constant 0 : index
    %c0_8 = arith.constant 0 : index
    %4 = vector.load %arg5[%c0_7, %c0_8] : memref<16x32xf32, #tpu.memory_space<vmem>>, vector<16x32xf32>
    %5 = tpu.iota {dimensions = array<i32: 1>} : vector<64x16xi32>
    %6 = vector.extract_strided_slice %1 {offsets = [0, 0], sizes = [64, 1], strides = [1, 1]} : vector<64x3xi32> to vector<64x1xi32>
    %7 = vector.broadcast %6 : vector<64x1xi32> to vector<64x16xi32>
    %8 = arith.cmpi eq, %7, %5 : vector<64x16xi32>
    %9 = arith.extui %8 : vector<64x16xi1> to vector<64x16xi32>
    %10 = arith.sitofp %9 : vector<64x16xi32> to vector<64x16xf32>
    %cst = arith.constant dense<0.000000e+00> : vector<64x32xf32>
    %11 = tpu.matmul %10, %2, %cst {dimension_numbers = #tpu.dot_dimension_numbers<[1], [0], [0], [1], [0, 0, 1, 1], [], []>} : vector<64x16xf32>, vector<16x32xf32>, vector<64x32xf32> -> vector<64x32xf32>
    %12 = vector.extract_strided_slice %1 {offsets = [0, 1], sizes = [64, 1], strides = [1, 1]} : vector<64x3xi32> to vector<64x1xi32>
    %13 = vector.broadcast %12 : vector<64x1xi32> to vector<64x16xi32>
    %14 = arith.cmpi eq, %13, %5 : vector<64x16xi32>
    %15 = arith.extui %14 : vector<64x16xi1> to vector<64x16xi32>
    %16 = arith.sitofp %15 : vector<64x16xi32> to vector<64x16xf32>
    %cst_9 = arith.constant dense<0.000000e+00> : vector<64x32xf32>
    %17 = tpu.matmul %16, %3, %cst_9 {dimension_numbers = #tpu.dot_dimension_numbers<[1], [0], [0], [1], [0, 0, 1, 1], [], []>} : vector<64x16xf32>, vector<16x32xf32>, vector<64x32xf32> -> vector<64x32xf32>
    %18 = vector.extract_strided_slice %1 {offsets = [0, 2], sizes = [64, 1], strides = [1, 1]} : vector<64x3xi32> to vector<64x1xi32>
    %19 = vector.broadcast %18 : vector<64x1xi32> to vector<64x16xi32>
    %20 = arith.cmpi eq, %19, %5 : vector<64x16xi32>
    %21 = arith.extui %20 : vector<64x16xi1> to vector<64x16xi32>
    %22 = arith.sitofp %21 : vector<64x16xi32> to vector<64x16xf32>
    %cst_10 = arith.constant dense<0.000000e+00> : vector<64x32xf32>
    %23 = tpu.matmul %22, %4, %cst_10 {dimension_numbers = #tpu.dot_dimension_numbers<[1], [0], [0], [1], [0, 0, 1, 1], [], []>} : vector<64x16xf32>, vector<16x32xf32>, vector<64x32xf32> -> vector<64x32xf32>
    %24 = arith.subf %11, %17 : vector<64x32xf32>
    %25 = arith.subf %11, %23 : vector<64x32xf32>
    %26 = arith.mulf %24, %24 : vector<64x32xf32>
    %27 = arith.mulf %25, %25 : vector<64x32xf32>
    %28 = arith.subf %26, %27 : vector<64x32xf32>
    %cst_11 = arith.constant dense<0.000000e+00> : vector<64xf32>
    %29 = vector.multi_reduction <add>, %28, %cst_11 [1] : vector<64x32xf32> to vector<64xf32>
    %30 = vector.shape_cast %29 : vector<64xf32> to vector<64x1xf32>
    %31 = vector.broadcast %0 : f32 to vector<64x1xf32>
    %32 = arith.addf %31, %30 : vector<64x1xf32>
    %cst_12 = arith.constant 0.000000e+00 : f32
    %33 = vector.broadcast %cst_12 : f32 to vector<64x1xf32>
    %34 = arith.maximumf %32, %33 : vector<64x1xf32>
    %c64_i32 = arith.constant 64 : i32
    %35 = arith.muli %arg0, %c64_i32 : i32
    %36 = tpu.iota {dimensions = array<i32: 0>} : vector<64x1xi32>
    %37 = vector.broadcast %35 : i32 to vector<64x1xi32>
    %38 = arith.addi %37, %36 : vector<64x1xi32>
    %c200_i32 = arith.constant 200 : i32
    %39 = vector.broadcast %c200_i32 : i32 to vector<64x1xi32>
    %40 = arith.cmpi slt, %38, %39 : vector<64x1xi32>
    %cst_13 = arith.constant 0.000000e+00 : f32
    %41 = vector.broadcast %cst_13 : f32 to vector<64x1xf32>
    %42 = arith.select %40, %34, %41 : vector<64x1xi1>, vector<64x1xf32>
    %43 = vector.shape_cast %42 : vector<64x1xf32> to vector<1x64x1xf32>
    %cst_14 = arith.constant dense<0.000000e+00> : vector<1xf32>
    %44 = vector.multi_reduction <add>, %43, %cst_14 [1, 2] : vector<1x64x1xf32> to vector<1xf32>
    %45 = vector.shape_cast %44 : vector<1xf32> to vector<1x1x1xf32>
    %46 = vector.extract %45[0, 0, 0] : f32 from vector<1x1x1xf32>
    %47 = vector.broadcast %46 : f32 to vector<1x8x128xf32>
    %c0_15 = arith.constant 0 : index
    %c0_16 = arith.constant 0 : index
    %c0_17 = arith.constant 0 : index
    %48 = vector.load %arg6[%c0_15, %c0_16, %c0_17] : memref<1x8x128xf32, #tpu.memory_space<vmem>>, vector<1x8x128xf32>
    tpu.vector_store %arg6[%c0_15, %c0_16, %c0_17], %47 {strides = array<i32>} : memref<1x8x128xf32, #tpu.memory_space<vmem>>, vector<1x8x128xf32>,
    return
  }
  func.func @transform_0(%arg0: i32) -> (i32, i32) {
    %c0_i32 = arith.constant 0 : i32
    %c0_i32_0 = arith.constant 0 : i32
    %c0_i32_1 = arith.constant 0 : i32
    return %c0_i32, %c0_i32_0 : i32, i32
  }
  func.func @transform_1(%arg0: i32) -> (i32, i32) {
    %c0_i32 = arith.constant 0 : i32
    %c0_i32_0 = arith.constant 0 : i32
    return %arg0, %c0_i32 : i32, i32
  }
  func.func @transform_2(%arg0: i32) -> (i32, i32) {
    %c0_i32 = arith.constant 0 : i32
    %c0_i32_0 = arith.constant 0 : i32
    %c0_i32_1 = arith.constant 0 : i32
    return %c0_i32, %c0_i32_0 : i32, i32
  }
  func.func @transform_3(%arg0: i32) -> (i32, i32) {
    %c0_i32 = arith.constant 0 : i32
    %c0_i32_0 = arith.constant 0 : i32
    %c0_i32_1 = arith.constant 0 : i32
    return %c0_i32, %c0_i32_0 : i32, i32
  }
  func.func @transform_4(%arg0: i32) -> (i32, i32) {
    %c0_i32 = arith.constant 0 : i32
    %c0_i32_0 = arith.constant 0 : i32
    %c0_i32_1 = arith.constant 0 : i32
    return %c0_i32, %c0_i32_0 : i32, i32
  }
  func.func @transform_5(%arg0: i32) -> (i32, i32, i32) {
    %c0_i32 = arith.constant 0 : i32
    %c0_i32_0 = arith.constant 0 : i32
    %c0_i32_1 = arith.constant 0 : i32
    return %arg0, %c0_i32, %c0_i32_0 : i32, i32, i32
  }
}

</mosaic_0001>

<bundles_post_ra>
// kernel: tpu_custom_call.1
= control target key start
LH: loop header
LB: loop body
LE: loop exit
PB: predicated region body
PF: predicated region fallthrough
CT: control target
= control target key end

     0   :  { %s1520_s0 = inlined_call_operand.<no memory space> [shape: f32[1,1], index: 0, kind: input, shape index: {}]   ;;  %s1521_s1 = inlined_call_operand.vmem [shape: s32[256,3], index: 1, kind: input, shape index: {}]   ;;  %s1522_s2 = inlined_call_operand.vmem [shape: f32[16,32], index: 2, kind: input, shape index: {}]   ;;  %s1523_s3 = inlined_call_operand.vmem [shape: f32[16,32], index: 3, kind: input, shape index: {}]   ;;  %s1524_s4 = inlined_call_operand.vmem [shape: f32[16,32], index: 4, kind: input, shape index: {}]   ;;  %s1525_s5 = inlined_call_operand.hbm [shape: f32[4,8,128], index: 5, kind: output, shape index: {}]  }
   0x1   :  { %10 = sst [smem:[#allocation2]] %s1520_s0 }
   0x2   :  { %11 = vsyncpa [#allocation4], 0 }
   0x3   :  { %13 = vsyncpa [#allocation4 + $0x1], 0  ;;  %s1302_s20 = smov 0   ;;  %s1304_s21 = smov 0  }
   0x4   :  { %s1306_s22 = smov 0   ;;  %s1308_s23 = smov 0  }
   0x5 LB: > { %s1323_s0 = sadd.s32 4294967295, %s1262_s23   ;;  %s992_s24 = sadd.s32 4294967294, %s1262_s23   ;;  %s1262_s23 = sphi %s1308_s23, %s1531_s23   ;;  %s1258_s22 = sphi %s1306_s22, %s1530_s22   ;;  %s1254_s21 = sphi %s1304_s21, %s1529_s21   ;;  %s1250_s20 = sphi %s1302_s20, %s1528_s20  }
   0x6   : > { %s1327_s25 = sadd.s32 1, %s1262_s23   ;;  %s136_s26 = sadd.s32 1, %s1258_s22 }
   0x7   : > { %s133_s27 = ssub.s32 %s1262_s23, %s1327_s25  ;;  %p146_p0 = scmp.ne.s32.totalorder %s1258_s22, %s1254_s21 }
   0x8   : > { %p134_p1 = scmp.eq.s32.totalorder %s133_s27, 0  ;;  %p147_p2 = scmp.eq.s32.totalorder %s1323_s0, 3 }
   0x9   : > { %p152_p3 = scmp.ne.s32.totalorder %s1254_s21, %s1250_s20  ;;  %p153_p4 = scmp.eq.s32.totalorder %s992_s24, 3 }
   0xa   : > { %s1338_s28 = scalar_select %p134_p1, %s1258_s22, %s136_s26  }
   0xb   : > { %p1340_p5 = por %p147_p2, %p146_p0  ;;  %p1344_p6 = por %p153_p4, %p152_p3 }
   0xc   : > { %p995_p7 = scmp.ge.s32.totalorder %s1262_s23, 1  ;;  %p192_p8 = scmp.lt.s32.totalorder %s1262_s23, 5 }
   0xe   : > { %p193_p9 = pnand %p995_p7, %p192_p8 }
   0xf   : > { %s997_s6 = sshll.u32 (!%p193_p9), %s1323_s0, 3  ;;  %v235_v0 = vld [vmem:[%s1522_s2] sm:$0xff] (!%p193_p9)  ;;  %v236_v1 = vld [vmem:[%s1522_s2 + $0x8] sm:$0xff] (!%p193_p9)  ;;  %v1264_v2 = vmov (!%p193_p9), 0   ;;  %v1265_v15 = vmov (!%p193_p9), 2   ;;  %v1266_v16 = vmov (!%p193_p9), 1   ;;  %v241_v20 = vlaneseq (!%p193_p9) }
  0x10   : > { %196 = sbr.rel (%p193_p9) target bundleno = 806 (0x326), region = 40  ;;  %1190 = vset.pattern.permute.xlu1 (!%p193_p9), %v1264_v2  ;;  %1189 = vset.pattern.permute.xlu0 (!%p193_p9), %v1264_v2  ;;  %p221_p10 = scmp.lt.s32.totalorder (!%p193_p9), %s997_s6, 31  ;;  %v1130_v3 = vpack.c.bf16 (!%p193_p9), %v236_v1, %v235_v0  ;;  %v239_v12 = vld [vmem:[%s1524_s4] sm:$0xff] (!%p193_p9)  ;;  %v240_v13 = vld [vmem:[%s1524_s4 + $0x8] sm:$0xff] (!%p193_p9)  ;;  %vm291_vm0 = vcmask (!%p193_p9), 130048   ;;  %v1267_v24 = vmov (!%p193_p9), 0.0  }
  0x11   : > { %v1138_v14 = vpack.c.bf16 (!%p193_p9), %v240_v13, %v239_v12  ;;  %v237_v17 = vld [vmem:[%s1523_s3] sm:$0xff] (!%p193_p9)  ;;  %v238_v18 = vld [vmem:[%s1523_s3 + $0x8] sm:$0xff] (!%p193_p9)  ;;  %v1373_v21 = vand.u32 (!%p193_p9), 127, %v241_v20  ;;  %s1047_s7 = sshll.u32 (!%p193_p9), %s1323_s0, 6  ;;  %s217_s8 = sand.u32 (!%p193_p9), 1, %s1254_s21  }
  0x12   : > { %1131 = vmatprep.subr.bf16.mxu0 (!%p193_p9), %v1130_v3  ;;  %1142 = vmatprep.subr.bf16.mxu1 (!%p193_p9), %v1130_v3  ;;  %v1134_v19 = vpack.c.bf16 (!%p193_p9), %v238_v18, %v237_v17  ;;  %s996_s9 = sshll.u32 (!%p193_p9), %s217_s8, 3  ;;  %s1049_s12 = sshll.u32 (!%p193_p9), %s1323_s0, 7 }
  0x13   : > { %1133 = vmatpush3.bf16.msra.mxu0 (!%p193_p9), %v1130_v3  ;;  %1143 = vmatpush3.bf16.msra.mxu1 (!%p193_p9), %v1130_v3  ;;  %s219_s10 = scalar_lea.vmem (!%p193_p9), [#allocation3], %s996_s9  ;;  %s1480_s16 = scalar_lea.hbm (!%p193_p9), %s1525_s5, %s1049_s12 }
  0x14   : > { %1139 = vmatprep.subr.bf16.mxu0 (!%p193_p9), %v1138_v14  ;;  %1135 = vmatprep.subr.bf16.mxu1 (!%p193_p9), %v1134_v19  ;;  %s920_s17 = scalar_lea.sflag (!%p193_p9), [#allocation4], %s217_s8  ;;  %s1268_s0 = smov (!%p193_p9), [#allocation3]  }
  0x15   : > { %s1204_s19 = sshll.u32 (!%p193_p9), %s1268_s0, 4  ;;  %s1205_s19 = int_to_ptr.vmem [resolvable:$false] %s1204_s19 }
  0x16   : > { %s1206_s24 = scalar_lea.vmem (!%p193_p9), %s1205_s19, 256 }
  0x17   : > { %s1533_s6 = smov (!%p221_p10, %s997_s6), 31 }
  0x18   : > { %s998_s11 = sshll.u32 %s1533_s6, 3  ;;  %s226_s6 = sld [smem:[#allocation2]] }
  0x19   : > { %s224_s14 = scalar_lea.vmem %s1521_s1, %s998_s11  ;;  %s933_s11 = sshll.u32 %s219_s10, 4  ;;  %s1475_s11 = int_to_ptr.vmem [resolvable:$true] %s933_s11 }
  0x1a   : > { %v228_v4 = vld [vmem:[%s224_s14 + $0x8] sm:$0xff]  ;;  %v227_v5 = vld [vmem:[%s224_s14] sm:$0xff]  ;;  %v233_v8 = vld [vmem:[%s224_s14 + $0x30] sm:$0xff]  ;;  %s1200_s18 = scalar_lea.vmem %s1475_s11, 128  ;;  %p1207_p0 = scmp.lt.s32.totalorder %s1475_s11, %s1205_s19 }
  0x1b   : > { %247 = vperm.xlu1 %1190, %v228_v4   ;;  %244 = vperm.xlu0 %1189, %v227_v5   ;;  %v232_v6 = vld [vmem:[%s224_s14 + $0x28] sm:$0xff]  ;;  %v231_v7 = vld [vmem:[%s224_s14 + $0x20] sm:$0xff]  ;;  %v229_v9 = vld [vmem:[%s224_s14 + $0x10] sm:$0xff]  ;;  %p1201_p11 = scmp.ne.s32.totalorder %s1475_s11, %s1200_s18  ;;  %p1208_p1 = scmp.lt.s32.totalorder %s1206_s24, %s1200_s18 }
  0x1c   : > { %v234_v10 = vld [vmem:[%s224_s14 + $0x38] sm:$0xff] }
  0x1d   : > { %v230_v11 = vld [vmem:[%s224_s14 + $0x18] sm:$0xff]  ;;  %p1202_p12 = pnand %p1201_p11, %p1340_p5  ;;  %p1209_p2 = por %p1208_p1, %p1207_p0 }
  0x1f   : > { %259 = vperm.xlu1 %1190, %v232_v6   ;;  %256 = vperm.xlu0 %1189, %v231_v7   ;;  %p1203_p13 = pneg %p1202_p12 }
  0x21   : > { %p1210_p3 = pnand %p1209_p2, %p1203_p13 }
  0x23   : > { %262 = vperm.xlu1 %1190, %v233_v8   ;;  %250 = vperm.xlu0 %1189, %v229_v9  }
  0x27   : > { %265 = vperm.xlu1 %1190, %v234_v10   ;;  %253 = vperm.xlu0 %1189, %v230_v11  }
  0x2b   : > { %1191 = vset.pattern.permute.xlu1 %v1265_v15  ;;  %1193 = vset.pattern.permute.xlu0 %v1265_v15 }
  0x2c   : > { %599 = vperm.xlu1 %1191, %v227_v5   ;;  %602 = vperm.xlu0 %1193, %v228_v4  }
  0x30   : > { %1192 = vset.pattern.permute.xlu1 %v1266_v16  ;;  %611 = vperm.xlu0 %1193, %v231_v7  }
  0x31   : > { %425 = vperm.xlu1 %1192, %v228_v4  }
  0x34   : > { %1196 = vset.pattern.permute.xlu0 %v1266_v16 }
  0x35   : > { %428 = vperm.xlu1 %1192, %v229_v9   ;;  %422 = vperm.xlu0 %1196, %v227_v5  }
  0x39   : > { %1194 = vset.pattern.permute.xlu1 %v1265_v15  ;;  %431 = vperm.xlu0 %1196, %v230_v11  }
  0x3a   : > { %605 = vperm.xlu1 %1194, %v229_v9  }
  0x3d   : > { %440 = vperm.xlu0 %1196, %v233_v8  }
  0x3e   : > { %608 = vperm.xlu1 %1194, %v230_v11  }
  0x41   : > { %1199 = vset.pattern.permute.xlu0 %v1265_v15 }
  0x42   : > { %1195 = vset.pattern.permute.xlu1 %v1266_v16  ;;  %620 = vperm.xlu0 %1199, %v234_v10  }
  0x43   : > { %434 = vperm.xlu1 %1195, %v231_v7  }
  0x47   : > { %437 = vperm.xlu1 %1195, %v232_v6  }
  0x4b   : > { %1197 = vset.pattern.permute.xlu1 %v1265_v15 }
  0x4c   : > { %614 = vperm.xlu1 %1197, %v232_v6  }
  0x50   : > { %617 = vperm.xlu1 %1197, %v233_v8  }
  0x54   : > { %1198 = vset.pattern.permute.xlu1 %v1266_v16 }
  0x55   : > { %443 = vperm.xlu1 %1198, %v234_v10  }
  0x9a   : > { %v248_v22 = vpop.permute.xlu1 %247  ;;  %v245_v23 = vpop.permute.xlu0 %244 }
  0x9b   : > { %vm268_vm1 = vcmp.eq.s32.totalorder %v248_v22, %v1373_v21  ;;  %vm267_vm2 = vcmp.eq.s32.totalorder %v245_v23, %v1373_v21 }
  0x9c   : > { %v1000_v25 = vsel %vm268_vm1, 1.0, %v1267_v24  ;;  %v999_v26 = vsel %vm267_vm2, 1.0, %v1267_v24 }
  0x9d   : > { %1086 = vmatprep.mubr.msk.f32.mxu0 %vm291_vm0, %v999_v26 }
  0x9e   : > { %v260_v27 = vpop.permute.xlu1 %259  ;;  %1087 = vmatmul.mubr.msk.f32.vlgmr.msra.gmra.mrb[0].mxu0 %vm291_vm0, %v1000_v25  ;;  %v257_v28 = vpop.permute.xlu0 %256 }
  0x9f   : > { %vm272_vm3 = vcmp.eq.s32.totalorder %v260_v27, %v1373_v21  ;;  %vm271_vm4 = vcmp.eq.s32.totalorder %v257_v28, %v1373_v21  ;;  %1141 = vmatpush3.bf16.msra.mxu0 %v1138_v14 }
  0xa0   : > { %v1004_v29 = vsel %vm272_vm3, 1.0, %v1267_v24  ;;  %v1003_v30 = vsel %vm271_vm4, 1.0, %v1267_v24 }
  0xa1   : > { %1092 = vmatprep.mubr.msk.f32.mxu1 %vm291_vm0, %v1003_v30 }
  0xa2   : > { %v263_v31 = vpop.permute.xlu1 %262  ;;  %1093 = vmatmul.mubr.msk.f32.vlgmr.msra.gmra.mrb[0].mxu1 %vm291_vm0, %v1004_v29  ;;  %v251_v32 = vpop.permute.xlu0 %250 }
  0xa3   : > { %vm273_vm5 = vcmp.eq.s32.totalorder %v263_v31, %v1373_v21  ;;  %vm269_vm6 = vcmp.eq.s32.totalorder %v251_v32, %v1373_v21  ;;  %1137 = vmatpush3.bf16.msra.mxu1 %v1134_v19 }
  0xa4   : > { %v1005_v33 = vsel %vm273_vm5, 1.0, %v1267_v24  ;;  %v1001_v34 = vsel %vm269_vm6, 1.0, %v1267_v24 }
  0xa5   : > { %1095 = vmatprep.mubr.msk.f32.mxu1 %vm291_vm0, %v1005_v33  ;;  %1089 = vmatprep.mubr.msk.f32.mxu0 %vm291_vm0, %v1001_v34 }
  0xa6   : > { %v266_v35 = vpop.permute.xlu1 %265  ;;  %v254_v36 = vpop.permute.xlu0 %253 }
  0xa7   : > { %vm274_vm7 = vcmp.eq.s32.totalorder %v266_v35, %v1373_v21  ;;  %vm270_vm8 = vcmp.eq.s32.totalorder %v254_v36, %v1373_v21 }
  0xa8   : > { %v1006_v37 = vsel %vm274_vm7, 1.0, %v1267_v24  ;;  %v1002_v38 = vsel %vm270_vm8, 1.0, %v1267_v24 }
  0xa9   : > { %1096 = vmatmul.mubr.msk.f32.gmra.mrb[2].mxu1 %vm291_vm0, %v1006_v37  ;;  %1090 = vmatmul.mubr.msk.f32.gmra.mrb[2].mxu0 %vm291_vm0, %v1002_v38 }
  0xab   : > { %v600_v39 = vpop.permute.xlu1 %599  ;;  %v603_v40 = vpop.permute.xlu0 %602 }
  0xac   : > { %vm622_vm9 = vcmp.eq.s32.totalorder %v600_v39, %v1373_v21  ;;  %vm623_vm10 = vcmp.eq.s32.totalorder %v603_v40, %v1373_v21 }
  0xad   : > { %v1031_v41 = vsel %vm622_vm9, 1.0, %v1267_v24  ;;  %v1032_v42 = vsel %vm623_vm10, 1.0, %v1267_v24 }
  0xae   : > { %1118 = vmatprep.mubr.msk.f32.mxu0 %vm291_vm0, %v1031_v41 }
  0xaf   : > { %1119 = vmatmul.mubr.msk.f32.vlgmr.msra.gmra.mrb[4].mxu0 %vm291_vm0, %v1032_v42  ;;  %v612_v43 = vpop.permute.xlu0 %611 }
  0xb0   : > { %v426_v44 = vpop.permute.xlu1 %425  ;;  %vm626_vm1 = vcmp.eq.s32.totalorder %v612_v43, %v1373_v21 }
  0xb1   : > { %vm446_vm11 = vcmp.eq.s32.totalorder %v426_v44, %v1373_v21  ;;  %v1035_v55 = vsel %vm626_vm1, 1.0, %v1267_v24 }
  0xb2   : > { %v1016_v48 = vsel %vm446_vm11, 1.0, %v1267_v24 }
  0xb4   : > { %v429_v45 = vpop.permute.xlu1 %428  ;;  %v423_v46 = vpop.permute.xlu0 %422 }
  0xb5   : > { %vm447_vm12 = vcmp.eq.s32.totalorder %v429_v45, %v1373_v21  ;;  %vm445_vm13 = vcmp.eq.s32.totalorder %v423_v46, %v1373_v21 }
  0xb6   : > { %v1015_v47 = vsel %vm445_vm13, 1.0, %v1267_v24  ;;  %v1017_v49 = vsel %vm447_vm12, 1.0, %v1267_v24  ;;  %vm892_vm13 = vcmask 7168  }
  0xb7   : > { %1102 = vmatprep.mubr.msk.f32.mxu1 %vm291_vm0, %v1015_v47 }
  0xb8   : > { %1103 = vmatmul.mubr.msk.f32.vlgmr.msra.gmra.mrb[4].mxu1 %vm291_vm0, %v1016_v48  ;;  %v432_v50 = vpop.permute.xlu0 %431 }
  0xb9   : > { %v606_v51 = vpop.permute.xlu1 %605  ;;  %1105 = vmatprep.mubr.msk.f32.mxu1 %vm291_vm0, %v1017_v49  ;;  %vm448_vm14 = vcmp.eq.s32.totalorder %v432_v50, %v1373_v21 }
  0xba   : > { %vm624_vm15 = vcmp.eq.s32.totalorder %v606_v51, %v1373_v21  ;;  %v1018_v52 = vsel %vm448_vm14, 1.0, %v1267_v24 }
  0xbb   : > { %v1033_v53 = vsel %vm624_vm15, 1.0, %v1267_v24 }
  0xbc   : > { %1106 = vmatmul.mubr.msk.f32.gmra.mrb[6].mxu1 %vm291_vm0, %v1018_v52  ;;  %1121 = vmatprep.mubr.msk.f32.mxu0 %vm291_vm0, %v1033_v53  ;;  %v441_v57 = vpop.permute.xlu0 %440 }
  0xbd   : > { %v609_v54 = vpop.permute.xlu1 %608  ;;  %vm451_vm4 = vcmp.eq.s32.totalorder %v441_v57, %v1373_v21 }
  0xbe   : > { %vm625_vm2 = vcmp.eq.s32.totalorder %v609_v54, %v1373_v21  ;;  %v1021_v61 = vsel %vm451_vm4, 1.0, %v1267_v24 }
  0xbf   : > { %v1034_v56 = vsel %vm625_vm2, 1.0, %v1267_v24 }
  0xc0   : > { %1122 = vmatmul.mubr.msk.f32.gmra.mrb[6].mxu0 %vm291_vm0, %v1034_v56 }
  0xc1   : > { %1124 = vmatprep.mubr.msk.f32.mxu0 %vm291_vm0, %v1035_v55  ;;  %v621_v63 = vpop.permute.xlu0 %620 }
  0xc2   : > { %v435_v58 = vpop.permute.xlu1 %434  ;;  %vm629_vm7 = vcmp.eq.s32.totalorder %v621_v63, %v1373_v21 }
  0xc3   : > { %vm449_vm3 = vcmp.eq.s32.totalorder %v435_v58, %v1373_v21  ;;  %v1038_v3 = vsel %vm629_vm7, 1.0, %v1267_v24 }
  0xc4   : > { %v1019_v59 = vsel %vm449_vm3, 1.0, %v1267_v24 }
  0xc5   : > { %1108 = vmatprep.mubr.msk.f32.mxu1 %vm291_vm0, %v1019_v59 }
  0xc6   : > { %v438_v60 = vpop.permute.xlu1 %437 }
  0xc7   : > { %vm450_vm5 = vcmp.eq.s32.totalorder %v438_v60, %v1373_v21 }
  0xc8   : > { %v1020_v62 = vsel %vm450_vm5, 1.0, %v1267_v24 }
  0xc9   : > { %1109 = vmatmul.mubr.msk.f32.gmra.mrb[8].mxu1 %vm291_vm0, %v1020_v62 }
  0xca   : > { %1111 = vmatprep.mubr.msk.f32.mxu1 %vm291_vm0, %v1021_v61 }
  0xcb   : > { %v615_v0 = vpop.permute.xlu1 %614 }
  0xcc   : > { %vm627_vm6 = vcmp.eq.s32.totalorder %v615_v0, %v1373_v21 }
  0xcd   : > { %v1036_v1 = vsel %vm627_vm6, 1.0, %v1267_v24 }
  0xce   : > { %1125 = vmatmul.mubr.msk.f32.gmra.mrb[8].mxu0 %vm291_vm0, %v1036_v1 }
  0xcf   : > { %v618_v2 = vpop.permute.xlu1 %617 }
  0xd0   : > { %vm628_vm8 = vcmp.eq.s32.totalorder %v618_v2, %v1373_v21 }
  0xd1   : > { %v1037_v4 = vsel %vm628_vm8, 1.0, %v1267_v24 }
  0xd2   : > { %1127 = vmatprep.mubr.msk.f32.mxu0 %vm291_vm0, %v1037_v4 }
  0xd3   : > { %1128 = vmatmul.mubr.msk.f32.gmra.mrb[10].mxu0 %vm291_vm0, %v1038_v3 }
  0xd4   : > { %v444_v5 = vpop.permute.xlu1 %443 }
  0xd5   : > { %vm452_vm9 = vcmp.eq.s32.totalorder %v444_v5, %v1373_v21 }
  0xd6   : > { %v1022_v6 = vsel %vm452_vm9, 1.0, %v1267_v24 }
  0xd7   : > { %1112 = vmatmul.mubr.msk.f32.gmra.mrb[10].mxu1 %vm291_vm0, %v1022_v6  ;;  %vm815_vm0 = vcmask 261120  }
 0x171   : > { %v1088_v7 = vpop.f32.mrb[0].mxu0 }
 0x172   : > { %v382_v8 = vpop.f32.mrb[1].mxu0 }
 0x175   : > { %v1094_v9 = vpop.f32.mrb[0].mxu1 }
 0x176   : > { %v402_v10 = vpop.f32.mrb[1].mxu1 }
 0x17c   : > { %v1447_v11 = vpop.f32.mrb[2].mxu1  ;;  %v1091_v12 = vpop.f32.mrb[2].mxu0 }
 0x17d   : > { %v1449_v13 = vpop.f32.mrb[3].mxu1  ;;  %v392_v14 = vpop.f32.mrb[3].mxu0 }
 0x182   : > { %v1120_v15 = vpop.f32.mrb[4].mxu0 }
 0x183   : > { %v784_v16 = vsub.f32 %v1088_v7, %v1120_v15  ;;  %v736_v17 = vpop.f32.mrb[5].mxu0 }
 0x184   : > { %v783_v18 = vsub.f32 %v382_v8, %v736_v17 }
 0x185   : > { %v800_v24 = vmul.f32 %v784_v16, %v784_v16 }
 0x186   : > { %v799_v26 = vmul.f32 %v783_v18, %v783_v18  ;;  %v859_v18 = vshrl.u32 %v241_v20, 7 }
 0x18b   : > { %v1104_v19 = vpop.f32.mrb[4].mxu1 }
 0x18c   : > { %v776_v21 = vsub.f32 %v1088_v7, %v1104_v19  ;;  %v559_v22 = vpop.f32.mrb[5].mxu1  ;;  %v840_v19 = vstv %s226_s6 }
 0x18d   : > { %v775_v23 = vsub.f32 %v382_v8, %v559_v22  ;;  %v867_v22 = vstv %s1047_s7 }
 0x18e   : > { %v792_v25 = vmul.f32 %v776_v21, %v776_v21  ;;  %v860_v21 = vadd.s32 8, %v859_v18 }
 0x18f   : > { %v791_v27 = vmul.f32 %v775_v23, %v775_v23  ;;  %v1107_v28 = vpop.f32.mrb[6].mxu1  ;;  %v861_v23 = vadd.s32 16, %v859_v18 }
 0x190   : > { %v778_v29 = vsub.f32 %v1091_v12, %v1107_v28  ;;  %v569_v30 = vpop.f32.mrb[7].mxu1  ;;  %v808_v31 = vsub.f32 %v792_v25, %v800_v24  ;;  %v868_v28 = vadd.s32 %v867_v22, %v859_v18 }
 0x191   : > { %v777_v32 = vsub.f32 %v392_v14, %v569_v30  ;;  %v807_v33 = vsub.f32 %v791_v27, %v799_v26  ;;  %v869_v27 = vadd.s32 %v867_v22, %v860_v21  ;;  %v870_v30 = vadd.s32 %v867_v22, %v861_v23 }
 0x192   : > { %v819_v34 = vsel %vm815_vm0, %v808_v31, 0.0  ;;  %v794_v40 = vmul.f32 %v778_v29, %v778_v29  ;;  %vm876_vm11 = vcmp.lt.s32.totalorder %v868_v28, 200 }
 0x193   : > { %v1123_v35 = vpop.f32.mrb[6].mxu0  ;;  %820 = vadd.xlane.f32.xlu0 %v819_v34  ;;  %v816_v36 = vsel %vm815_vm0, %v807_v33, 0.0  ;;  %v793_v42 = vmul.f32 %v777_v32, %v777_v32  ;;  %vm877_vm10 = vcmp.lt.s32.totalorder %v869_v27, 200  ;;  %v862_v33 = vadd.s32 24, %v859_v18 }
 0x194   : > { %v786_v37 = vsub.f32 %v1091_v12, %v1123_v35  ;;  %v746_v38 = vpop.f32.mrb[7].mxu0  ;;  %817 = vadd.xlane.f32.xlu1 %v816_v36  ;;  %v863_v35 = vadd.s32 32, %v859_v18  ;;  %vm878_vm12 = vcmp.lt.s32.totalorder %v870_v30, 200 }
 0x195   : > { %v785_v39 = vsub.f32 %v392_v14, %v746_v38 }
 0x196   : > { %v802_v41 = vmul.f32 %v786_v37, %v786_v37 }
 0x197   : > { %v801_v43 = vmul.f32 %v785_v39, %v785_v39  ;;  %v871_v39 = vadd.s32 %v867_v22, %v862_v33 }
 0x198   : > { %v810_v44 = vsub.f32 %v794_v40, %v802_v41  ;;  %v864_v41 = vadd.s32 40, %v859_v18 }
 0x199   : > { %v809_v45 = vsub.f32 %v793_v42, %v801_v43  ;;  %v872_v42 = vadd.s32 %v867_v22, %v863_v35  ;;  %vm879_vm14 = vcmp.lt.s32.totalorder %v871_v39, 200 }
 0x19a   : > { %v825_v46 = vsel %vm815_vm0, %v810_v44, 0.0 }
 0x19b   : > { %826 = vadd.xlane.f32.xlu0 %v825_v46  ;;  %v822_v47 = vsel %vm815_vm0, %v809_v45, 0.0  ;;  %vm880_vm15 = vcmp.lt.s32.totalorder %v872_v42, 200 }
 0x19c   : > { %823 = vadd.xlane.f32.xlu1 %v822_v47  ;;  %v1110_v48 = vpop.f32.mrb[8].mxu1 }
 0x19d   : > { %v780_v49 = vsub.f32 %v1094_v9, %v1110_v48  ;;  %v579_v50 = vpop.f32.mrb[9].mxu1 }
 0x19e   : > { %v779_v51 = vsub.f32 %v402_v10, %v579_v50 }
 0x19f   : > { %v796_v56 = vmul.f32 %v780_v49, %v780_v49 }
 0x1a0   : > { %v795_v58 = vmul.f32 %v779_v51, %v779_v51  ;;  %v873_v51 = vadd.s32 %v867_v22, %v864_v41 }
 0x1a1   : > { %v1126_v52 = vpop.f32.mrb[8].mxu0 }
 0x1a2   : > { %v788_v53 = vsub.f32 %v1094_v9, %v1126_v52  ;;  %v756_v54 = vpop.f32.mrb[9].mxu0  ;;  %vm881_vm1 = vcmp.lt.s32.totalorder %v873_v51, 200 }
 0x1a3   : > { %v787_v55 = vsub.f32 %v402_v10, %v756_v54  ;;  %v866_v54 = vadd.s32 56, %v859_v18 }
 0x1a4   : > { %v804_v57 = vmul.f32 %v788_v53, %v788_v53 }
 0x1a5   : > { %v803_v59 = vmul.f32 %v787_v55, %v787_v55  ;;  %v865_v55 = vadd.s32 48, %v859_v18 }
 0x1a6   : > { %v1129_v60 = vpop.f32.mrb[10].mxu0  ;;  %v812_v61 = vsub.f32 %v796_v56, %v804_v57 }
 0x1a7   : > { %v790_v62 = vsub.f32 %v1447_v11, %v1129_v60  ;;  %v766_v63 = vpop.f32.mrb[11].mxu0  ;;  %v811_v0 = vsub.f32 %v795_v58, %v803_v59 }
 0x1a8   : > { %v789_v1 = vsub.f32 %v1449_v13, %v766_v63  ;;  %v831_v2 = vsel %vm815_vm0, %v812_v61, 0.0  ;;  %v874_v63 = vadd.s32 %v867_v22, %v865_v55 }
 0x1a9   : > { %832 = vadd.xlane.f32.xlu0 %v831_v2  ;;  %v828_v3 = vsel %vm815_vm0, %v811_v0, 0.0  ;;  %v806_v8 = vmul.f32 %v790_v62, %v790_v62  ;;  %v875_v62 = vadd.s32 %v867_v22, %v866_v54 }
 0x1aa   : > { %829 = vadd.xlane.f32.xlu1 %v828_v3  ;;  %v1113_v4 = vpop.f32.mrb[10].mxu1  ;;  %v805_v10 = vmul.f32 %v789_v1, %v789_v1  ;;  %vm882_vm3 = vcmp.lt.s32.totalorder %v874_v63, 200 }
 0x1ab   : > { %v782_v5 = vsub.f32 %v1447_v11, %v1113_v4  ;;  %v589_v6 = vpop.f32.mrb[11].mxu1  ;;  %vm883_vm2 = vcmp.lt.s32.totalorder %v875_v62, 200 }
 0x1ac   : > { %v781_v7 = vsub.f32 %v1449_v13, %v589_v6 }
 0x1ad   : > { %v798_v9 = vmul.f32 %v782_v5, %v782_v5 }
 0x1ae   : > { %v797_v12 = vmul.f32 %v781_v7, %v781_v7 }
 0x1af   : > { %v814_v14 = vsub.f32 %v798_v9, %v806_v8 }
 0x1b0   : > { %v813_v15 = vsub.f32 %v797_v12, %v805_v10 }
 0x1b1   : > { %v837_v16 = vsel %vm815_vm0, %v814_v14, 0.0 }
 0x1b2   : > { %838 = vadd.xlane.f32.xlu0 %v837_v16  ;;  %v834_v17 = vsel %vm815_vm0, %v813_v15, 0.0 }
 0x1b3   : > { %835 = vadd.xlane.f32.xlu1 %v834_v17 }
 0x220   : > { %v821_v13 = vpop.xlane.xlu0 %820 }
 0x221   : > { %v818_v11 = vpop.xlane.xlu1 %817  ;;  %v842_v25 = vadd.f32 %v840_v19, %v821_v13 }
 0x222   : > { %v841_v26 = vadd.f32 %v840_v19, %v818_v11 }
 0x223   : > { %v850_v31 = vmax.f32 %v842_v25, 0.0 }
 0x224   : > { %v849_v32 = vmax.f32 %v841_v26, 0.0 }
 0x225   : > { %v885_v36 = vsel %vm877_vm10, %v850_v31, 0.0 }
 0x226   : > { %v884_v37 = vsel %vm876_vm11, %v849_v32, 0.0  ;;  %v894_v43 = vsel %vm892_vm13, %v885_v36, 0.0 }
 0x227   : > { %v893_v44 = vsel %vm892_vm13, %v884_v37, 0.0 }
 0x228   : > { %v827_v20 = vpop.xlane.xlu0 %826  ;;  %v895_v50 = vadd.f32 %v894_v43, %v893_v44 }
 0x229   : > { %v824_v24 = vpop.xlane.xlu1 %823  ;;  %v844_v38 = vadd.f32 %v840_v19, %v827_v20 }
 0x22a   : > { %v843_v29 = vadd.f32 %v840_v19, %v824_v24 }
 0x22b   : > { %v852_v46 = vmax.f32 %v844_v38, 0.0 }
 0x22c   : > { %v851_v34 = vmax.f32 %v843_v29, 0.0 }
 0x22d   : > { %v887_v56 = vsel %vm879_vm14, %v852_v46, 0.0 }
 0x22e   : > { %v886_v40 = vsel %vm878_vm12, %v851_v34, 0.0  ;;  %v898_v60 = vsel %vm892_vm13, %v887_v56, 0.0 }
 0x22f   : > { %v896_v48 = vsel %vm892_vm13, %v886_v40, 0.0 }
 0x230   : > { %v897_v57 = vadd.f32 %v896_v48, %v895_v50 }
 0x232   : > { %v899_v0 = vadd.f32 %v898_v60, %v897_v57 }
 0x236   : > { %v833_v45 = vpop.xlane.xlu0 %832 }
 0x237   : > { %v830_v47 = vpop.xlane.xlu1 %829  ;;  %v846_v52 = vadd.f32 %v840_v19, %v833_v45 }
 0x238   : > { %v845_v49 = vadd.f32 %v840_v19, %v830_v47 }
 0x239   : > { %v854_v59 = vmax.f32 %v846_v52, 0.0 }
 0x23a   : > { %v853_v53 = vmax.f32 %v845_v49, 0.0 }
 0x23b   : > { %v889_v4 = vsel %vm881_vm1, %v854_v59, 0.0 }
 0x23c   : > { %v888_v58 = vsel %vm880_vm15, %v853_v53, 0.0  ;;  %v902_v9 = vsel %vm892_vm13, %v889_v4, 0.0 }
 0x23d   : > { %v900_v61 = vsel %vm892_vm13, %v888_v58, 0.0 }
 0x23e   : > { %v901_v5 = vadd.f32 %v900_v61, %v899_v0 }
 0x23f   : > { %v839_v1 = vpop.xlane.xlu0 %838 }
 0x240   : > { %v848_v2 = vadd.f32 %v840_v19, %v839_v1  ;;  %v836_v3 = vpop.xlane.xlu1 %835  ;;  %v903_v14 = vadd.f32 %v902_v9, %v901_v5 }
 0x241   : > { %v847_v6 = vadd.f32 %v840_v19, %v836_v3 }
 0x242   : > { %v856_v7 = vmax.f32 %v848_v2, 0.0 }
 0x243   : > { %v855_v8 = vmax.f32 %v847_v6, 0.0 }
 0x244   : > { %v891_v10 = vsel %vm883_vm2, %v856_v7, 0.0 }
 0x245   : > { %v890_v12 = vsel %vm882_vm3, %v855_v8, 0.0  ;;  %v906_v17 = vsel %vm892_vm13, %v891_v10, 0.0 }
 0x246   : > { %v904_v15 = vsel %vm892_vm13, %v890_v12, 0.0 }
 0x247   : > { %v905_v16 = vadd.f32 %v904_v15, %v903_v14 }
 0x249   : > { %v907_v18 = vadd.f32 %v906_v17, %v905_v16 }
 0x24b   : > { %908 = vadd.xlane.f32.xlu1 %v907_v18 }
 0x2d8   : > { %v909_v11 = vpop.xlane.xlu1 %908 }
 0x2d9   : > { %v910_v19 = vrot.slane %v909_v11, 4 }
 0x2db   : > { %v911_v21 = vadd.f32 %v910_v19, %v909_v11 }
 0x2dd   : > { %v912_v13 = vrot.slane %v911_v21, 2 }
 0x2df   : > { %v913_v22 = vadd.f32 %v912_v13, %v911_v21 }
 0x2e1   : > { %v914_v23 = vrot.slane %v913_v22, 1 }
 0x2e3   : > { %v915_v24 = vadd.f32 %v914_v23, %v913_v22 }
 0x2e5   : > { %1144 = vpush %v915_v24 }
 0x316   : > { %s1145_s13 = spop %1144 }
 0x317   : > { %v917_v25 = vstv %s1145_s13 }
 0x318   : > { %918 = vst [vmem:[%s219_s10] sm:$0xff] %v917_v25 }
 0x319   : > { %1213 = shalt.err (!%p1210_p3)
}
 0x31a   : > { %s1214_s26 = scalar_lea.hbm %s1480_s16, 128  ;;  %s1218_s7 = scalar_lea.hbm %s1525_s5, 512 }
 0x31b   : > { %p1215_p4 = scmp.ne.s32.totalorder %s1480_s16, %s1214_s26  ;;  %p1219_p9 = scmp.lt.u32.totalorder %s1480_s16, %s1525_s5 }
 0x31c   : > { %p1220_p10 = scmp.lt.u32.totalorder %s1218_s7, %s1214_s26  ;;  %p1222_p12 = scmp.lt.u32.totalorder %s1214_s26, %s1480_s16 }
 0x31d   : > { %p1216_p7 = pnand %p1215_p4, %p1340_p5 }
 0x31e   : > { %p1221_p11 = por %p1220_p10, %p1219_p9 }
 0x31f   : > { %p1217_p8 = pneg %p1216_p7 }
 0x320   : > { %p1223_p13 = por %p1222_p12, %p1221_p11 }
 0x322   : > { %p1224_p0 = pnand %p1223_p13, %p1217_p8 }
 0x324   : > { %1227 = shalt.err (!%p1224_p0)
}
 0x325   : > { %1146 = dma.vmem_to_hbm [thread:$0]  (%p1340_p5), %s1475_s11, 128, %s1480_s16, %s920_s17  }
 0x326 PF: > { %p1152_p1 = scmp.ge.s32.totalorder %s1262_s23, 2  ;;  %s945_s10 = sand.u32 1, %s1250_s20  }
 0x327   : > { %s946_s12 = scalar_lea.sflag [#allocation4], %s945_s10 }
 0x328   : > { %p1149_p2 = pnand %p1152_p1, %p1344_p6 }
 0x32a   : > { %1245 = dma.done.wait (!%p1149_p2), %s946_s12, 128  }
 0x32b   : > { %1247 = vsyncadd (!%p1149_p2), %s946_s12, 4294967168  ;;  %p16_p3 = scmp.ge.s32.totalorder %s1327_s25, 6   ;;  %s1528_s20 = smov %s1254_s21 }
 0x32c   : > { %s1529_s21 = smov %s1258_s22  ;;  %s1530_s22 = smov %s1338_s28 }
 0x32d   : > { %s1531_s23 = smov %s1327_s25  ;;  %18 = sbr.rel (!%p16_p3) target bundleno = 5 (0x5), region = 75 }
 0x334   :  { %951 = vsyncpa [#allocation4], 1 }
 0x335   :  { %953 = vsyncpa [#allocation4 + $0x1], 1 }

</bundles_post_ra>
